<compile_context>
chip_gen: v7x
topology: tpu7x:2x2x1
jax: 0.10.0
libtpu: 0.0.40
codegen_flags: <defaults>
</compile_context>

<pallas_src>
from functools import partial

import numpy as np
import jax
import jax.numpy as jnp
from jax import lax
from jax.experimental import pallas as pl
from jax.experimental.pallas import tpu as pltpu


# ---------------------------------------------------------------------------
# Pallas kernel: per-sample gather of the visible tokens
# ---------------------------------------------------------------------------
def _shuffle_visible_kernel(start_ref, x_ref, o_ref, *, r, c, w):
    # start_ref: SMEM (B,) int32   -- stripe start column per sample (prefetched)
    # x_ref:     VMEM (T, C)       -- one sample's tokens, T = r*c on sublanes
    # o_ref:     VMEM (n_vis, C)   -- visible tokens, n_vis = r*(c-w)
    vc = c - w                                  # visible columns per grid row (static)
    b = pl.program_id(0)
    s = start_ref[b]                            # dynamic stripe start for this sample

    # Sublane index inside a (vc, C) window -- hoisted out of the row loop.
    k = lax.broadcasted_iota(jnp.int32, (vc, 1), 0)
    left_valid = k < s                          # window col k is a visible left col
    right_valid = k >= s                        # window col (w + k) is a visible right col

    def row_body(i, carry):
        # LEFT run of row i: cols [0, vc); the valid prefix has length s.
        #   out[i*s + k] = x[i*c + k]        for k < s
        lw = x_ref[pl.ds(i * c, vc), :]
        ldst = i * s
        lcur = o_ref[pl.ds(ldst, vc), :]
        o_ref[pl.ds(ldst, vc), :] = jnp.where(left_valid, lw, lcur)

        # RIGHT run of row i: cols [w, c); the valid suffix has length vc - s.
        #   out[r*s + i*(c-e) + (k-s)] = x[i*c + w + k]   for k >= s  (e = s + w)
        rw = x_ref[pl.ds(i * c + w, vc), :]
        rdst = (r - 1) * s + i * (vc - s)
        rcur = o_ref[pl.ds(rdst, vc), :]
        o_ref[pl.ds(rdst, vc), :] = jnp.where(right_valid, rw, rcur)
        return carry

    # Every output row receives exactly one un-masked (valid) write; masked rows
    # are read-modify-write-backs, so the final tile is exact regardless of order.
    lax.fori_loop(0, r, row_body, 0)


def take_visible_patches(patches, start_cols, *, num_rows, num_cols, stripe_width):
    """out[v, b, :] = patches[fwd[v, b], b, :] for v < r*(c-w), fwd as in PatchShuffle."""
    T, B, C = patches.shape
    r, c, w = num_rows, num_cols, stripe_width
    assert T == r * c
    assert 0 < w < c, "stripe must leave at least one visible column"
    assert C % 128 == 0, "channel dim must stay lane-dense (multiple of 128)"
    n_vis = r * (c - w)

    starts = jnp.asarray(start_cols, dtype=jnp.int32)      # (B,) -> SMEM scalar prefetch
    x2 = patches.reshape(T, B * C)                          # free view: per-sample 128k-lane blocks

    kernel = partial(_shuffle_visible_kernel, r=r, c=c, w=w)
    out2 = pl.pallas_call(
        kernel,
        out_shape=jax.ShapeDtypeStruct((n_vis, B * C), patches.dtype),
        grid_spec=pltpu.PrefetchScalarGridSpec(
            num_scalar_prefetch=1,
            grid=(B,),                                      # one sample per grid step
            in_specs=[pl.BlockSpec((T, C), lambda b, starts: (0, b))],
            out_specs=pl.BlockSpec((n_vis, C), lambda b, starts: (0, b)),
        ),
        compiler_params=pltpu.CompilerParams(
            dimension_semantics=("parallel",),              # shard samples across TCs (v7x)
        ),
    )(starts, x2)
    return out2.reshape(n_vis, B, C)


# ---------------------------------------------------------------------------
# Host glue: stripe selection bookkeeping (scalar work, tiny arrays)
# ---------------------------------------------------------------------------
def build_shuffle_indexes(start_cols, num_rows, num_cols, stripe_width):
    r, c, w = num_rows, num_cols, stripe_width
    T = r * c
    grid = np.arange(T, dtype=np.int32).reshape(r, c)
    fwd_list, bwd_list, bounds = [], [], []
    for s in start_cols:
        e = s + w
        visible = np.concatenate([grid[:, :s].reshape(-1), grid[:, e:].reshape(-1)])
        masked = grid[:, s:e].reshape(-1)
        fwd = np.concatenate([visible, masked])
        bwd = np.argsort(fwd)
        fwd_list.append(fwd)
        bwd_list.append(bwd)
        bounds.append([s, e])
    forward_indexes = jnp.asarray(np.stack(fwd_list, axis=-1), dtype=jnp.int32)   # (T, B)
    backward_indexes = jnp.asarray(np.stack(bwd_list, axis=-1), dtype=jnp.int32)  # (T, B)
    stripe_bounds = jnp.asarray(np.array(bounds, dtype=np.int32).T)               # (2, B)
    n_visible = r * (c - w)
    return forward_indexes, backward_indexes, stripe_bounds, n_visible


def patch_shuffle_forward(patches, start_cols, ratio, num_rows, num_cols):
    """Mirrors PatchShuffle.forward: returns (visible_patches, fwd, bwd, bounds)."""
    T, B, C = patches.shape
    assert T == num_rows * num_cols
    stripe_width = max(1, int(num_cols * ratio))
    fwd, bwd, bounds, _ = build_shuffle_indexes(start_cols, num_rows, num_cols, stripe_width)
    visible = take_visible_patches(patches, start_cols, num_rows=num_rows,
                                   num_cols=num_cols, stripe_width=stripe_width)
    return visible, fwd, bwd, bounds


# ---------------------------------------------------------------------------
# Pure-JAX reference for validation
# ---------------------------------------------------------------------------
def reference_patch_shuffle(patches, forward_indexes, n_visible):
    T, B, C = patches.shape
    idx = jnp.broadcast_to(forward_indexes[:, :, None], (T, B, C))
    return jnp.take_along_axis(patches, idx, axis=0)[:n_visible]


if __name__ == "__main__":
    key = jax.random.PRNGKey(0)
    k_patches, k_stripe = jax.random.split(key)

    num_rows, num_cols = 4, 8          # patch grid 4 x 8  ->  T = 32 tokens
    B, C = 4, 128                      # C on the 128-lane axis (lane-dense)
    ratio = 0.75                       # mask 75% of columns -> stripe width 6
    T = num_rows * num_cols
    stripe_width = max(1, int(num_cols * ratio))

    patches = jax.random.normal(k_patches, (T, B, C), jnp.float32)
    # TODO(synk): PyTorch uses host-side random.randint per sample; replaced by a
    # deterministic jax.random draw over the same inclusive range.
    start_cols = [int(s) for s in jax.device_get(
        jax.random.randint(k_stripe, (B,), 0, num_cols - stripe_width + 1))]

    visible, fwd, bwd, bounds = patch_shuffle_forward(
        patches, start_cols, ratio, num_rows, num_cols)
    jax.block_until_ready(visible)

    n_vis = num_rows * (num_cols - stripe_width)
    ref_visible = reference_patch_shuffle(patches, fwd, n_vis)

    assert visible.shape == (n_vis, B, C)
    assert fwd.shape == (T, B) and bwd.shape == (T, B) and bounds.shape == (2, B)
    # pure data movement -> must be bit-exact
    assert bool(jnp.array_equal(visible, ref_visible))
    # backward_indexes inverts forward_indexes
    assert bool(jnp.array_equal(
        jnp.take_along_axis(fwd, bwd, axis=0),
        jnp.broadcast_to(jnp.arange(T, dtype=jnp.int32)[:, None], (T, B))))

    print("KERNEL_OK")
</pallas_src>

<mosaic_0001>
module attributes {stable_mosaic.version = 11 : i64} {
  func.func @_shuffle_visible_kernel(%arg0: i32, %arg1: memref<4xi32, #tpu.memory_space<smem>>, %arg2: memref<32x128xf32, #tpu.memory_space<vmem>>, %arg3: memref<8x128xf32, #tpu.memory_space<vmem>>) attributes {dimension_semantics = [#tpu.dimension_semantics<parallel>], iteration_bounds = array<i64: 4>, scalar_prefetch = 1 : i64, scratch_operands = 0 : i64, tpu.core_type = #tpu.core_type<tc>, window_params = [{transform_indices = @transform_0, window_bounds = array<i64: 32, 128>}, {transform_indices = @transform_1, window_bounds = array<i64: 8, 128>}]} {
    %0 = arith.index_cast %arg0 : i32 to index
    %1 = memref.load %arg1[%0] : memref<4xi32, #tpu.memory_space<smem>>
    %2 = tpu.iota {dimensions = array<i32: 0>} : vector<2x1xi32>
    %3 = vector.broadcast %1 : i32 to vector<2x1xi32>
    %4 = arith.cmpi slt, %2, %3 : vector<2x1xi32>
    %5 = vector.broadcast %1 : i32 to vector<2x1xi32>
    %6 = arith.cmpi sge, %2, %5 : vector<2x1xi32>
    %c0_i32 = arith.constant 0 : i32
    %c4_i32 = arith.constant 4 : i32
    %7 = arith.addi %c0_i32, %c4_i32 : i32
    %c1_i32 = arith.constant 1 : i32
    scf.for %arg4 = %c0_i32 to %7 step %c1_i32  : i32 {
      %c8_i32 = arith.constant 8 : i32
      %8 = arith.muli %arg4, %c8_i32 : i32
      %9 = arith.index_cast %8 : i32 to index
      %c0 = arith.constant 0 : index
      %10 = vector.load %arg2[%9, %c0] : memref<32x128xf32, #tpu.memory_space<vmem>>, vector<2x128xf32>
      %11 = arith.muli %arg4, %1 : i32
      %12 = arith.index_cast %11 : i32 to index
      %c0_1 = arith.constant 0 : index
      %13 = vector.load %arg3[%12, %c0_1] : memref<8x128xf32, #tpu.memory_space<vmem>>, vector<2x128xf32>
      %14 = vector.shape_cast %4 : vector<2x1xi1> to vector<2x1xi1>
      %15 = vector.broadcast %14 : vector<2x1xi1> to vector<2x128xi1>
      %16 = arith.select %15, %10, %13 : vector<2x128xi1>, vector<2x128xf32>
      %17 = arith.index_cast %11 : i32 to index
      %c0_2 = arith.constant 0 : index
      %18 = vector.load %arg3[%17, %c0_2] : memref<8x128xf32, #tpu.memory_space<vmem>>, vector<2x128xf32>
      tpu.vector_store %arg3[%17, %c0_2], %16 {strides = array<i32>} : memref<8x128xf32, #tpu.memory_space<vmem>>, vector<2x128xf32>,
      %c8_i32_3 = arith.constant 8 : i32
      %19 = arith.muli %arg4, %c8_i32_3 : i32
      %c6_i32 = arith.constant 6 : i32
      %20 = arith.addi %19, %c6_i32 : i32
      %21 = arith.index_cast %20 : i32 to index
      %c0_4 = arith.constant 0 : index
      %22 = vector.load %arg2[%21, %c0_4] : memref<32x128xf32, #tpu.memory_space<vmem>>, vector<2x128xf32>
      %c3_i32 = arith.constant 3 : i32
      %23 = arith.muli %c3_i32, %1 : i32
      %c2_i32 = arith.constant 2 : i32
      %24 = arith.subi %c2_i32, %1 : i32
      %25 = arith.muli %arg4, %24 : i32
      %26 = arith.addi %23, %25 : i32
      %27 = arith.index_cast %26 : i32 to index
      %c0_5 = arith.constant 0 : index
      %28 = vector.load %arg3[%27, %c0_5] : memref<8x128xf32, #tpu.memory_space<vmem>>, vector<2x128xf32>
      %29 = vector.shape_cast %6 : vector<2x1xi1> to vector<2x1xi1>
      %30 = vector.broadcast %29 : vector<2x1xi1> to vector<2x128xi1>
      %31 = arith.select %30, %22, %28 : vector<2x128xi1>, vector<2x128xf32>
      %32 = arith.index_cast %26 : i32 to index
      %c0_6 = arith.constant 0 : index
      %33 = vector.load %arg3[%32, %c0_6] : memref<8x128xf32, #tpu.memory_space<vmem>>, vector<2x128xf32>
      tpu.vector_store %arg3[%32, %c0_6], %31 {strides = array<i32>} : memref<8x128xf32, #tpu.memory_space<vmem>>, vector<2x128xf32>,
    }
    %c4_i32_0 = arith.constant 4 : i32
    return
  }
  func.func @transform_0(%arg0: i32, %arg1: memref<4xi32, #tpu.memory_space<smem>>) -> (i32, i32) {
    %c0_i32 = arith.constant 0 : i32
    %c0_i32_0 = arith.constant 0 : i32
    return %c0_i32, %arg0 : i32, i32
  }
  func.func @transform_1(%arg0: i32, %arg1: memref<4xi32, #tpu.memory_space<smem>>) -> (i32, i32) {
    %c0_i32 = arith.constant 0 : i32
    %c0_i32_0 = arith.constant 0 : i32
    return %c0_i32, %arg0 : i32, i32
  }
}

</mosaic_0001>

<bundles_post_ra>
// kernel: tpu_custom_call.1
= control target key start
LH: loop header
LB: loop body
LE: loop exit
PB: predicated region body
PF: predicated region fallthrough
CT: control target
= control target key end

     0   :  { %s678_s0 = inlined_call_operand.hbm [shape: s32[4], index: 0, kind: input, shape index: {}]   ;;  %s679_s1 = inlined_call_operand.hbm [shape: f32[32,512], index: 1, kind: input, shape index: {}]   ;;  %s680_s2 = inlined_call_operand.hbm [shape: f32[8,512], index: 2, kind: output, shape index: {}]  }
   0x1   :  { %s345_s11 = scalar_lea.hbm %s678_s0, 16 }
   0x2   :  { %p346_p0 = scmp.ne.s32.totalorder %s678_s0, %s345_s11  ;;  %p349_p1 = scmp.lt.u32.totalorder %s345_s11, %s678_s0 }
   0x4   :  { %p351_p2 = pnand %p349_p1, %p346_p0 }
   0x6   :  { %354 = shalt.err (!%p351_p2)  }
   0x7   :  { %s463_s16 = smov [#allocation3]  }
   0x8   :  { %8 = dma.hbm_to_smem %s678_s0, 16, %s463_s16, [#allocation2] }
   0x9   :  { %433 = dma.done.wait [#allocation2], 16 }
   0xa   :  { %434 = vsyncadd [#allocation2], 4294967280 }
   0xb   :  { %10 = sfence }
   0xc   :  { %11 = vsyncpa [#allocation5], 0 }
   0xd   :  { %13 = vsyncpa [#allocation5 + $0x1], 0 }
   0xe   :  { %14 = vsyncpa [#allocation6], 0 }
   0xf   :  { %16 = vsyncpa [#allocation6 + $0x1], 0  ;;  %s496_s19 = smov 0   ;;  %s498_s20 = smov 0  }
  0x10   :  { %s500_s21 = smov 0   ;;  %s502_s22 = smov 0  }
  0x11 LB: > { %s517_s0 = sadd.s32 4294967295, %s457_s22   ;;  %s272_s23 = sadd.s32 4294967294, %s457_s22   ;;  %s457_s22 = sphi %s502_s22, %s697_s22   ;;  %s453_s21 = sphi %s500_s21, %s696_s21   ;;  %s449_s20 = sphi %s498_s20, %s695_s20   ;;  %s445_s19 = sphi %s496_s19, %s694_s19  }
  0x12   : > { %s521_s24 = sadd.s32 1, %s457_s22   ;;  %s29_s25 = sadd.s32 1, %s453_s21 }
  0x13   : > { %s26_s26 = ssub.s32 %s457_s22, %s521_s24  ;;  %p36_p3 = scmp.ne.s32.totalorder %s453_s21, %s449_s20 }
  0x14   : > { %p27_p4 = scmp.eq.s32.totalorder %s26_s26, 0  ;;  %p37_p5 = scmp.eq.s32.totalorder %s457_s22, 0 }
  0x15   : > { %p42_p6 = scmp.ne.s32.totalorder %s449_s20, %s445_s19  ;;  %p43_p7 = scmp.eq.s32.totalorder %s517_s0, 0 }
  0x16   : > { %s533_s27 = scalar_select %p27_p4, %s453_s21, %s29_s25  }
  0x17   : > { %p535_p8 = por %p37_p5, %p36_p3  ;;  %p539_p9 = por %p43_p7, %p42_p6 }
  0x18   : > { %p66_p10 = scmp.eq.s32.totalorder %s517_s0, 3  ;;  %p72_p11 = scmp.eq.s32.totalorder %s272_s23, 3 }
  0x19   : > { %p299_p12 = scmp.lt.s32.totalorder %s457_s22, 4  ;;  %s92_s4 = sand.u32 1, %s453_s21  }
  0x1a   : > { %p545_p13 = por %p66_p10, %p36_p3  ;;  %p549_p0 = por %p72_p11, %p42_p6 }
  0x1b   : > { %s276_s5 = sshll.u32 %s457_s22, 7  ;;  %s275_s6 = sshll.u32 %s92_s4, 5 }
  0x1c   : > { %s684_s30 = scalar_select %p545_p13, 1, 0 }
  0x1d   : > { %s685_s3 = scalar_select %p549_p0, 1, 0 }
  0x1e   : > { %s558_s9 = scalar_lea.hbm %s679_s1, %s276_s5  ;;  %s96_s10 = scalar_lea.vmem [#allocation4], %s275_s6 }
  0x1f   : > { %s102_s11 = sshll.u32 %s96_s10, 4  ;;  %p562_p1 = pnand %p299_p12, %p535_p8  ;;  %s566_s11 = int_to_ptr.vmem [resolvable:$true] %s102_s11 }
  0x20   : > { %s569_s13 = scalar_lea.sflag [#allocation5], %s92_s4  ;;  %s355_s14 = scalar_lea.hbm %s558_s9, 512 }
  0x21   : > { %p356_p3 = scmp.ne.s32.totalorder %s558_s9, %s355_s14  ;;  %p357_p4 = pneg %p562_p1 }
  0x22   : > { %s360_s17 = scalar_lea.hbm %s679_s1, 2048  ;;  %p361_p7 = scmp.lt.u32.totalorder %s558_s9, %s679_s1 }
  0x23   : > { %p358_p5 = pnand %p357_p4, %p356_p3  ;;  %p362_p8 = scmp.lt.u32.totalorder %s360_s17, %s355_s14 }
  0x24   : > { %p364_p11 = scmp.lt.u32.totalorder %s355_s14, %s558_s9 }
  0x25   : > { %p359_p6 = pneg %p358_p5  ;;  %p363_p10 = por %p362_p8, %p361_p7 }
  0x27   : > { %p365_p12 = por %p364_p11, %p363_p10 }
  0x29   : > { %p366_p2 = pnand %p365_p12, %p359_p6 }
  0x2b   : > { %369 = shalt.err (!%p366_p2)
}
  0x2c   : > { %s370_s25 = scalar_lea.vmem %s566_s11, 512  ;;  %s464_s26 = smov [#allocation4]  }
  0x2d   : > { %p371_p3 = scmp.ne.s32.totalorder %s566_s11, %s370_s25  ;;  %s375_s28 = sshll.u32 %s464_s26, 4  ;;  %s376_s28 = int_to_ptr.vmem [resolvable:$false] %s375_s28 }
  0x2e   : > { %s377_s4 = scalar_lea.vmem %s376_s28, 1024  ;;  %p378_p13 = scmp.lt.s32.totalorder %s566_s11, %s376_s28 }
  0x2f   : > { %p373_p5 = pnand %p371_p3, %p357_p4  ;;  %p379_p7 = scmp.lt.s32.totalorder %s377_s4, %s370_s25 }
  0x31   : > { %p374_p0 = pneg %p373_p5  ;;  %p380_p8 = por %p379_p7, %p378_p13 }
  0x33   : > { %p381_p10 = pnand %p380_p8, %p374_p0 }
  0x35   : > { %384 = shalt.err (!%p381_p10)
}
  0x36   : > { %s465_s5 = smov 512   ;;  %s466_s6 = smov 128  }
  0x37   : > { %s467_s7 = smov 8   ;;  %p110_p2 = scmp.lt.s32.totalorder %s457_s22, 5 }
  0x38   : > { %294 = dma.hbm_to_vmem [thread:$0]  (!%p562_p1), %s558_s9, 512, %s566_s11, %s569_s13, %s465_s5, %s466_s6, %s467_s7  }
  0x39   : > { %p687_p4 = scmp.ge.s32.totalorder %s457_s22, 1 }
  0x3b   : > { %p111_p6 = pnand %p687_p4, %p110_p2 }
  0x3c   : > { %s601_s8 = sand.u32 (!%p111_p6), 1, %s449_s20  }
  0x3d   : > { %114 = sbr.rel (%p111_p6) target bundleno = 109 (0x6d), region = 24  ;;  %s278_s10 = sshll.u32 (!%p111_p6), %s601_s8, 5 }
  0x3e   : > { %s117_s14 = scalar_lea.sflag (!%p111_p6), [#allocation5], %s601_s8  ;;  %s605_s15 = scalar_lea.vmem (!%p111_p6), [#allocation4], %s278_s10 }
  0x44   : > { %436 = dma.done.wait (%p539_p9), %s117_s14, 512  }
  0x45   : > { %438 = vsyncadd (%p539_p9), %s117_s14, 4294966784  ;;  %v140_v0 = vlaneseq  ;;  %s279_s9 = sshll.u32 %s601_s8, 3  ;;  %s613_s11 = sld [smem:[#allocation3 + %s517_s0]] }
  0x46   : > { %s624_s12 = scalar_lea.vmem [#allocation7], %s279_s9  ;;  %s459_s29 = smov 0  }
  0x47   : > { %v141_v1 = vshrl.u32 %v140_v0, 7 }
  0x4b   : > { %v142_v2 = vstv %s613_s11 }
  0x4c   : > { %vm616_vm0 = vcmp.lt.s32.totalorder %v141_v1, %v142_v2  ;;  %vm620_vm1 = vcmp.ge.s32.totalorder %v141_v1, %v142_v2 }
  0x4d LB: >> { %s165_s13 = ssub.s32 2, %s613_s11  ;;  %s280_s16 = sshll.u32 %s461_s29, 3  ;;  %s461_s29 = sphi %s459_s29, %s150_s29  }
  0x4e   : >> { %s154_s17 = smul.u32 %s461_s29, %s613_s11  ;;  %s152_s18 = scalar_lea.vmem %s605_s15, %s280_s16 [#allocation4] }
  0x4f   : >> { %s164_s23 = smul.u32 3, %s613_s11  ;;  %v153_v5 = vld [vmem:[%s152_s18] sm:$0x3]  ;;  %v282_v8 = vld [vmem:[%s152_s18 + $0x6] sm:$0x3] }
  0x50   : >> { %s155_s25 = scalar_lea.vmem %s624_s12, %s154_s17 [#allocation7]  ;;  %s166_s26 = smul.u32 %s461_s29, %s165_s13 }
  0x51   : >> { %v156_v6 = vld [vmem:[%s155_s25] sm:$0x3]  ;;  %s150_s29 = sadd.s32 1, %s461_s29  }
  0x52   : >> { %v159_v7 = vsel %vm616_vm0, %v153_v5, %v156_v6  ;;  %s167_s28 = sadd.s32 %s166_s26, %s164_s23  ;;  %p147_p9 = scmp.ge.s32.totalorder %s150_s29, 4  }
  0x53   : >> { %160 = vst [vmem:[%s155_s25] sm:$0x3] %v159_v7  ;;  %s168_s4 = scalar_lea.vmem %s624_s12, %s167_s28 [#allocation7]  ;;  %s284_s5 = sshll.u32 (%p147_p9), %s517_s0, 7 }
  0x54   : > { %s640_s10 = scalar_lea.hbm (%p147_p9), %s680_s2, %s284_s5  ;;  %s188_s14 = sshll.u32 (%p147_p9), %s624_s12, 4  ;;  %s189_s14 = int_to_ptr.vmem [resolvable:$true] %s188_s14 }
  0x55   : > { %s175_s9 = scalar_lea.sflag (%p147_p9), [#allocation6], %s601_s8  ;;  %s385_s13 = scalar_lea.vmem (%p147_p9), %s189_s14, 128 }
  0x56   : > { %149 = sbr.rel (!%p147_p9) target bundleno = 77 (0x4d), region = 80  ;;  %p386_p13 = scmp.ne.s32.totalorder (%p147_p9), %s189_s14, %s385_s13 }
  0x57   : > { %p692_p0 = scmp.ne.s32.totalorder (%p147_p9), %s684_s30, 0  ;;  %s468_s29 = smov (%p147_p9), [#allocation7]  }
  0x58   : > { %s389_s16 = sshll.u32 (%p147_p9), %s468_s29, 4  ;;  %s390_s16 = int_to_ptr.vmem [resolvable:$false] %s389_s16 }
  0x59   : > { %p387_p1 = pnand (%p147_p9), %p386_p13, %p692_p0  ;;  %s391_s15 = scalar_lea.vmem (%p147_p9), %s390_s16, 256 }
  0x5a   : >> { %v169_v9 = vld [vmem:[%s168_s4] sm:$0x3]  ;;  %p392_p12 = scmp.lt.s32.totalorder (%p147_p9), %s189_s14, %s390_s16  ;;  %p393_p3 = scmp.lt.s32.totalorder (%p147_p9), %s391_s15, %s385_s13 }
  0x5b   : >> { %v172_v10 = vsel %vm620_vm1, %v282_v8, %v169_v9  ;;  %p388_p11 = pneg (%p147_p9), %p387_p1 }
  0x5c   : >> { %173 = vst [vmem:[%s168_s4] sm:$0x3] %v172_v10  ;;  %p394_p5 = por (%p147_p9), %p393_p3, %p392_p12 }
  0x5e   : > { %p395_p7 = pnand %p394_p5, %p388_p11 }
  0x60   : > { %398 = shalt.err (!%p395_p7)
}
  0x61   : > { %s399_s0 = scalar_lea.hbm %s640_s10, 128  ;;  %s403_s12 = scalar_lea.hbm %s680_s2, 512 }
  0x62   : > { %p400_p8 = scmp.ne.s32.totalorder %s640_s10, %s399_s0  ;;  %p404_p4 = scmp.lt.u32.totalorder %s640_s10, %s680_s2 }
  0x63   : > { %p405_p6 = scmp.lt.u32.totalorder %s403_s12, %s399_s0  ;;  %p407_p13 = scmp.lt.u32.totalorder %s399_s0, %s640_s10 }
  0x64   : > { %p401_p10 = pnand %p400_p8, %p692_p0 }
  0x65   : > { %p406_p9 = por %p405_p6, %p404_p4 }
  0x66   : > { %p402_p2 = pneg %p401_p10 }
  0x67   : > { %p408_p1 = por %p407_p13, %p406_p9 }
  0x69   : > { %p409_p11 = pnand %p408_p1, %p402_p2 }
  0x6b   : > { %412 = shalt.err (!%p409_p11)
}
  0x6c   : > { %289 = dma.vmem_to_hbm [thread:$0]  (%p692_p0), %s189_s14, 128, %s640_s10, %s175_s9  }
  0x6d PF: > { %p300_p12 = scmp.ge.s32.totalorder %s457_s22, 2  ;;  %s200_s23 = sand.u32 1, %s445_s19  }
  0x6e   : > { %p693_p3 = scmp.ne.s32.totalorder %s685_s3, 0  ;;  %s201_s25 = scalar_lea.sflag [#allocation6], %s200_s23 }
  0x70   : > { %p296_p5 = pnand %p300_p12, %p693_p3 }
  0x72   : > { %440 = dma.done.wait (!%p296_p5), %s201_s25, 128  }
  0x73   : > { %442 = vsyncadd (!%p296_p5), %s201_s25, 4294967168  ;;  %p19_p7 = scmp.ge.s32.totalorder %s521_s24, 6   ;;  %s694_s19 = smov %s449_s20 }
  0x74   : > { %s695_s20 = smov %s453_s21  ;;  %s696_s21 = smov %s533_s27 }
  0x75   : > { %s697_s22 = smov %s521_s24  ;;  %21 = sbr.rel (!%p19_p7) target bundleno = 17 (0x11), region = 91 }
  0x7c   :  { %206 = vsyncpa [#allocation5], 1 }
  0x7d   :  { %208 = vsyncpa [#allocation5 + $0x1], 1 }
  0x7e   :  { %209 = vsyncpa [#allocation6], 1 }
  0x7f   :  { %211 = vsyncpa [#allocation6 + $0x1], 1 }

</bundles_post_ra>
